<compile_context>
chip_gen: v7x
topology: tpu7x:2x2x1
jax: 0.10.0
libtpu: 0.0.40
codegen_flags: <defaults>
</compile_context>

<pallas_src>
import jax
import jax.numpy as jnp
from jax.experimental import pallas as pl
from jax.experimental.pallas import tpu as pltpu

_LANE = 128
_SUBLANE = 8


def _round_up(n, m):
    return ((n + m - 1) // m) * m


def decoder_kernel(x_ref, w1_ref, b1_ref, w2_ref, b2_ref, w3_ref, b3_ref, o_ref):
    x = x_ref[...]

    # Layer 1: Linear + Tanh   (dropout1 == identity in eval mode)
    z1 = jnp.dot(x, w1_ref[...], preferred_element_type=jnp.float32) + b1_ref[...]
    h1 = jnp.tanh(z1)

    # Layer 2: Linear + ELU(alpha=1)   (dropout2 == identity in eval mode)
    z2 = jnp.dot(h1, w2_ref[...], preferred_element_type=jnp.float32) + b2_ref[...]
    h2 = jnp.where(z2 > 0, z2, jnp.exp(jnp.minimum(z2, 0.0)) - 1.0)

    # Layer 3: Linear + Sigmoid + clip.
    # Approx reciprocal lowers to the EUP slot -> no f32 divide on the VPU for
    # the widest elementwise tensor in the kernel.
    z3 = jnp.dot(h2, w3_ref[...], preferred_element_type=jnp.float32) + b3_ref[...]
    s = pl.reciprocal(1.0 + jnp.exp(-z3), approx=True)
    o_ref[...] = jnp.clip(s, 1e-8, 1.0 - 1e-8).astype(o_ref.dtype)


def decoder_forward(x, params, *, tile_b=1024):
    """x: [B, input_dim] float32. params: dict with w1,b1,w2,b2,w3,b3 ([in,out] layout)."""
    w1, b1, w2, b2, w3, b3 = (params[k] for k in ("w1", "b1", "w2", "b2", "w3", "b3"))
    B, in_dim = x.shape
    hid = w1.shape[1]
    out_dim = w3.shape[1]

    # Lane-dense padded feature dims (zeros do not change the valid outputs:
    # tanh(0)=0, ELU(0)=0, padded weight rows/cols are zero).
    hid_p = _round_up(hid, _LANE)
    out_p = _round_up(out_dim, _LANE)
    w1p = jnp.pad(w1, ((0, 0), (0, hid_p - hid)))
    b1p = jnp.pad(b1, ((0, 0), (0, hid_p - hid)))
    w2p = jnp.pad(w2, ((0, hid_p - hid), (0, hid_p - hid)))
    b2p = jnp.pad(b2, ((0, 0), (0, hid_p - hid)))
    w3p = jnp.pad(w3, ((0, hid_p - hid), (0, out_p - out_dim)))
    b3p = jnp.pad(b3, ((0, 0), (0, out_p - out_dim)))

    # Batch tile: as large as possible (pipeline efficiency), but keep >= 2 grid
    # steps when B allows so both v7x TensorCores get work; pad the ragged edge.
    tile = min(tile_b, max(_SUBLANE, _round_up(pl.cdiv(B, 2), _SUBLANE)))
    B_pad = _round_up(B, tile)
    xp = jnp.pad(x, ((0, B_pad - B), (0, 0))) if B_pad != B else x

    grid = (B_pad // tile,)
    out = pl.pallas_call(
        decoder_kernel,
        out_shape=jax.ShapeDtypeStruct((B_pad, out_p), jnp.float32),
        grid_spec=pltpu.PrefetchScalarGridSpec(
            num_scalar_prefetch=0,
            grid=grid,
            in_specs=[
                pl.BlockSpec((tile, in_dim), lambda i: (i, 0)),   # x tile (streamed)
                pl.BlockSpec((in_dim, hid_p), lambda i: (0, 0)),  # w1 (resident)
                pl.BlockSpec((1, hid_p), lambda i: (0, 0)),       # b1
                pl.BlockSpec((hid_p, hid_p), lambda i: (0, 0)),   # w2
                pl.BlockSpec((1, hid_p), lambda i: (0, 0)),       # b2
                pl.BlockSpec((hid_p, out_p), lambda i: (0, 0)),   # w3
                pl.BlockSpec((1, out_p), lambda i: (0, 0)),       # b3
            ],
            out_specs=pl.BlockSpec((tile, out_p), lambda i: (i, 0)),  # lane-dense out
        ),
        compiler_params=pltpu.CompilerParams(
            dimension_semantics=("parallel",),
            vmem_limit_bytes=32 * 1024 * 1024,
        ),
    )(xp, w1p, b1p, w2p, b2p, w3p, b3p)

    return out[:B, :out_dim]


def init_params(key, input_dim, hidden_dim, output_dim):
    """Deterministic init mimicking torch.nn.Linear's U(-1/sqrt(fan_in), +1/sqrt(fan_in))."""
    ks = jax.random.split(key, 6)

    def lin(kw, kb, fan_in, fan_out):
        bound = 1.0 / jnp.sqrt(fan_in)
        w = jax.random.uniform(kw, (fan_in, fan_out), jnp.float32, -bound, bound)
        b = jax.random.uniform(kb, (1, fan_out), jnp.float32, -bound, bound)
        return w, b

    w1, b1 = lin(ks[0], ks[1], input_dim, hidden_dim)
    w2, b2 = lin(ks[2], ks[3], hidden_dim, hidden_dim)
    w3, b3 = lin(ks[4], ks[5], hidden_dim, output_dim)
    return {"w1": w1, "b1": b1, "w2": w2, "b2": b2, "w3": w3, "b3": b3}


def decoder_ref(x, p):
    """Pure-JAX reference (exact sigmoid) for correctness check."""
    h1 = jnp.tanh(x @ p["w1"] + p["b1"])
    z2 = h1 @ p["w2"] + p["b2"]
    h2 = jnp.where(z2 > 0, z2, jnp.exp(jnp.minimum(z2, 0.0)) - 1.0)
    s = jax.nn.sigmoid(h2 @ p["w3"] + p["b3"])
    return jnp.clip(s, 1e-8, 1.0 - 1e-8)


if __name__ == "__main__":
    # Small shapes consistent with the module's forward. Batch is deliberately
    # NOT a multiple of the tile to exercise the padded / multi-step grid path.
    batch, input_dim, hidden_dim, output_dim = 10, 16, 32, 379

    key = jax.random.PRNGKey(0)
    k_x, k_p = jax.random.split(key)
    x = jax.random.normal(k_x, (batch, input_dim), dtype=jnp.float32)
    params = init_params(k_p, input_dim, hidden_dim, output_dim)

    out = decoder_forward(x, params)
    out = jax.block_until_ready(out)

    ref = decoder_ref(x, params)
    assert out.shape == (batch, output_dim)
    # Tolerance accounts for the EUP approximate reciprocal in the sigmoid.
    assert jnp.allclose(out, ref, atol=5e-3, rtol=5e-3), "mismatch vs JAX reference"
    assert bool(jnp.all(jnp.isfinite(out)))

    print("KERNEL_OK")
</pallas_src>

<mosaic_0001>
module attributes {stable_mosaic.version = 11 : i64} {
  func.func @decoder_kernel(%arg0: i32, %arg1: memref<8x16xf32, #tpu.memory_space<vmem>>, %arg2: memref<16x128xf32, #tpu.memory_space<vmem>>, %arg3: memref<1x128xf32, #tpu.memory_space<vmem>>, %arg4: memref<128x128xf32, #tpu.memory_space<vmem>>, %arg5: memref<1x128xf32, #tpu.memory_space<vmem>>, %arg6: memref<128x384xf32, #tpu.memory_space<vmem>>, %arg7: memref<1x384xf32, #tpu.memory_space<vmem>>, %arg8: memref<8x384xf32, #tpu.memory_space<vmem>>) attributes {dimension_semantics = [#tpu.dimension_semantics<parallel>], iteration_bounds = array<i64: 2>, scalar_prefetch = 0 : i64, scratch_operands = 0 : i64, tpu.core_type = #tpu.core_type<tc>, window_params = [{transform_indices = @transform_0, window_bounds = array<i64: 8, 16>}, {pipeline_mode = #tpu.pipeline_mode<synchronous>, transform_indices = @transform_1, window_bounds = array<i64: 16, 128>}, {pipeline_mode = #tpu.pipeline_mode<synchronous>, transform_indices = @transform_2, window_bounds = array<i64: 1, 128>}, {pipeline_mode = #tpu.pipeline_mode<synchronous>, transform_indices = @transform_3, window_bounds = array<i64: 128, 128>}, {pipeline_mode = #tpu.pipeline_mode<synchronous>, transform_indices = @transform_4, window_bounds = array<i64: 1, 128>}, {pipeline_mode = #tpu.pipeline_mode<synchronous>, transform_indices = @transform_5, window_bounds = array<i64: 128, 384>}, {pipeline_mode = #tpu.pipeline_mode<synchronous>, transform_indices = @transform_6, window_bounds = array<i64: 1, 384>}, {transform_indices = @transform_7, window_bounds = array<i64: 8, 384>}]} {
    %c0 = arith.constant 0 : index
    %c0_0 = arith.constant 0 : index
    %0 = vector.load %arg1[%c0, %c0_0] : memref<8x16xf32, #tpu.memory_space<vmem>>, vector<8x16xf32>
    %c0_1 = arith.constant 0 : index
    %c0_2 = arith.constant 0 : index
    %1 = vector.load %arg2[%c0_1, %c0_2] : memref<16x128xf32, #tpu.memory_space<vmem>>, vector<16x128xf32>
    %cst = arith.constant dense<0.000000e+00> : vector<8x128xf32>
    %2 = tpu.matmul %0, %1, %cst {dimension_numbers = #tpu.dot_dimension_numbers<[1], [0], [0], [1], [0, 0, 1, 1], [], []>} : vector<8x16xf32>, vector<16x128xf32>, vector<8x128xf32> -> vector<8x128xf32>
    %c0_3 = arith.constant 0 : index
    %c0_4 = arith.constant 0 : index
    %3 = vector.load %arg3[%c0_3, %c0_4] : memref<1x128xf32, #tpu.memory_space<vmem>>, vector<1x128xf32>
    %4 = vector.broadcast %3 : vector<1x128xf32> to vector<8x128xf32>
    %5 = arith.addf %2, %4 : vector<8x128xf32>
    %6 = math.tanh %5 : vector<8x128xf32>
    %c0_5 = arith.constant 0 : index
    %c0_6 = arith.constant 0 : index
    %7 = vector.load %arg4[%c0_5, %c0_6] : memref<128x128xf32, #tpu.memory_space<vmem>>, vector<128x128xf32>
    %cst_7 = arith.constant dense<0.000000e+00> : vector<8x128xf32>
    %8 = tpu.matmul %6, %7, %cst_7 {dimension_numbers = #tpu.dot_dimension_numbers<[1], [0], [0], [1], [0, 0, 1, 1], [], []>} : vector<8x128xf32>, vector<128x128xf32>, vector<8x128xf32> -> vector<8x128xf32>
    %c0_8 = arith.constant 0 : index
    %c0_9 = arith.constant 0 : index
    %9 = vector.load %arg5[%c0_8, %c0_9] : memref<1x128xf32, #tpu.memory_space<vmem>>, vector<1x128xf32>
    %10 = vector.broadcast %9 : vector<1x128xf32> to vector<8x128xf32>
    %11 = arith.addf %8, %10 : vector<8x128xf32>
    %cst_10 = arith.constant 0.000000e+00 : f32
    %12 = vector.broadcast %cst_10 : f32 to vector<8x128xf32>
    %13 = arith.cmpf ogt, %11, %12 : vector<8x128xf32>
    %cst_11 = arith.constant 0.000000e+00 : f32
    %14 = vector.broadcast %cst_11 : f32 to vector<8x128xf32>
    %15 = arith.minimumf %11, %14 : vector<8x128xf32>
    %16 = math.exp %15 : vector<8x128xf32>
    %cst_12 = arith.constant 1.000000e+00 : f32
    %17 = vector.broadcast %cst_12 : f32 to vector<8x128xf32>
    %18 = arith.subf %16, %17 : vector<8x128xf32>
    %19 = arith.select %13, %11, %18 : vector<8x128xi1>, vector<8x128xf32>
    %c0_13 = arith.constant 0 : index
    %c0_14 = arith.constant 0 : index
    %20 = vector.load %arg6[%c0_13, %c0_14] : memref<128x384xf32, #tpu.memory_space<vmem>>, vector<128x384xf32>
    %cst_15 = arith.constant dense<0.000000e+00> : vector<8x384xf32>
    %21 = tpu.matmul %19, %20, %cst_15 {dimension_numbers = #tpu.dot_dimension_numbers<[1], [0], [0], [1], [0, 0, 1, 1], [], []>} : vector<8x128xf32>, vector<128x384xf32>, vector<8x384xf32> -> vector<8x384xf32>
    %c0_16 = arith.constant 0 : index
    %c0_17 = arith.constant 0 : index
    %22 = vector.load %arg7[%c0_16, %c0_17] : memref<1x384xf32, #tpu.memory_space<vmem>>, vector<1x384xf32>
    %23 = vector.broadcast %22 : vector<1x384xf32> to vector<8x384xf32>
    %24 = arith.addf %21, %23 : vector<8x384xf32>
    %cst_18 = arith.constant 0.000000e+00 : f32
    %25 = vector.broadcast %cst_18 : f32 to vector<8x384xf32>
    %26 = arith.subf %25, %24 : vector<8x384xf32>
    %27 = math.exp %26 : vector<8x384xf32>
    %cst_19 = arith.constant 1.000000e+00 : f32
    %28 = vector.broadcast %cst_19 : f32 to vector<8x384xf32>
    %29 = arith.addf %28, %27 : vector<8x384xf32>
    %30 = tpu.reciprocal %29 {approx = true} : vector<8x384xf32> -> vector<8x384xf32>
    %cst_20 = arith.constant 9.99999993E-9 : f32
    %cst_21 = arith.constant 1.000000e+00 : f32
    %31 = vector.broadcast %cst_20 : f32 to vector<8x384xf32>
    %32 = arith.maximumf %31, %30 : vector<8x384xf32>
    %33 = vector.broadcast %cst_21 : f32 to vector<8x384xf32>
    %34 = arith.minimumf %33, %32 : vector<8x384xf32>
    %c0_22 = arith.constant 0 : index
    %c0_23 = arith.constant 0 : index
    %35 = vector.load %arg8[%c0_22, %c0_23] : memref<8x384xf32, #tpu.memory_space<vmem>>, vector<8x384xf32>
    tpu.vector_store %arg8[%c0_22, %c0_23], %34 {strides = array<i32>} : memref<8x384xf32, #tpu.memory_space<vmem>>, vector<8x384xf32>,
    return
  }
  func.func @transform_0(%arg0: i32) -> (i32, i32) {
    %c0_i32 = arith.constant 0 : i32
    %c0_i32_0 = arith.constant 0 : i32
    return %arg0, %c0_i32 : i32, i32
  }
  func.func @transform_1(%arg0: i32) -> (i32, i32) {
    %c0_i32 = arith.constant 0 : i32
    %c0_i32_0 = arith.constant 0 : i32
    %c0_i32_1 = arith.constant 0 : i32
    return %c0_i32, %c0_i32_0 : i32, i32
  }
  func.func @transform_2(%arg0: i32) -> (i32, i32) {
    %c0_i32 = arith.constant 0 : i32
    %c0_i32_0 = arith.constant 0 : i32
    %c0_i32_1 = arith.constant 0 : i32
    return %c0_i32, %c0_i32_0 : i32, i32
  }
  func.func @transform_3(%arg0: i32) -> (i32, i32) {
    %c0_i32 = arith.constant 0 : i32
    %c0_i32_0 = arith.constant 0 : i32
    %c0_i32_1 = arith.constant 0 : i32
    return %c0_i32, %c0_i32_0 : i32, i32
  }
  func.func @transform_4(%arg0: i32) -> (i32, i32) {
    %c0_i32 = arith.constant 0 : i32
    %c0_i32_0 = arith.constant 0 : i32
    %c0_i32_1 = arith.constant 0 : i32
    return %c0_i32, %c0_i32_0 : i32, i32
  }
  func.func @transform_5(%arg0: i32) -> (i32, i32) {
    %c0_i32 = arith.constant 0 : i32
    %c0_i32_0 = arith.constant 0 : i32
    %c0_i32_1 = arith.constant 0 : i32
    return %c0_i32, %c0_i32_0 : i32, i32
  }
  func.func @transform_6(%arg0: i32) -> (i32, i32) {
    %c0_i32 = arith.constant 0 : i32
    %c0_i32_0 = arith.constant 0 : i32
    %c0_i32_1 = arith.constant 0 : i32
    return %c0_i32, %c0_i32_0 : i32, i32
  }
  func.func @transform_7(%arg0: i32) -> (i32, i32) {
    %c0_i32 = arith.constant 0 : i32
    %c0_i32_0 = arith.constant 0 : i32
    return %arg0, %c0_i32 : i32, i32
  }
}

</mosaic_0001>

<bundles_post_ra>
// kernel: tpu_custom_call.1
= control target key start
LH: loop header
LB: loop body
LE: loop exit
PB: predicated region body
PF: predicated region fallthrough
CT: control target
= control target key end

     0   :  { %12 = vsyncpa [#allocation3], 0  ;;  %s1715_s0 = inlined_call_operand.hbm [shape: f32[16,16], index: 0, kind: input, shape index: {}]   ;;  %s1716_s1 = inlined_call_operand.hbm [shape: f32[16,128], index: 1, kind: input, shape index: {}]   ;;  %s1717_s2 = inlined_call_operand.vmem [shape: f32[1,128], index: 2, kind: input, shape index: {}]   ;;  %s1718_s3 = inlined_call_operand.hbm [shape: f32[128,128], index: 3, kind: input, shape index: {}]   ;;  %s1719_s4 = inlined_call_operand.vmem [shape: f32[1,128], index: 4, kind: input, shape index: {}]   ;;  %s1720_s5 = inlined_call_operand.hbm [shape: f32[128,384], index: 5, kind: input, shape index: {}]   ;;  %s1721_s6 = inlined_call_operand.vmem [shape: f32[1,384], index: 6, kind: input, shape index: {}]   ;;  %s1722_s7 = inlined_call_operand.hbm [shape: f32[16,384], index: 7, kind: output, shape index: {}]  }
   0x1   :  { %14 = vsyncpa [#allocation3 + $0x1], 0 }
   0x2   :  { %15 = vsyncpa [#allocation6], 0 }
   0x3   :  { %16 = vsyncpa [#allocation9], 0 }
   0x4   :  { %17 = vsyncpa [#allocation4], 0 }
   0x5   :  { %19 = vsyncpa [#allocation4 + $0x1], 0  ;;  %s1427_s24 = smov 0   ;;  %s1429_s25 = smov 0  }
   0x6   :  { %s1431_s26 = smov 0   ;;  %s1433_s27 = smov 0  }
   0x7 LB: > { %s1448_s28 = sadd.s32 4294967295, %s1373_s27   ;;  %s866_s29 = sadd.s32 4294967294, %s1373_s27   ;;  %s1373_s27 = sphi %s1433_s27, %s1748_s27   ;;  %s1369_s26 = sphi %s1431_s26, %s1747_s26   ;;  %s1365_s25 = sphi %s1429_s25, %s1746_s25   ;;  %s1361_s24 = sphi %s1427_s24, %s1745_s24  }
   0x8   : > { %p45_p0 = scmp.ne.s32.totalorder %s1365_s25, %s1361_s24  ;;  %p1723_p1 = scmp.eq.s32.totalorder %s1448_s28, 0 }
   0x9   : > { %p201_p3 = scmp.eq.s32.totalorder %s866_s29, 1  ;;  %p867_p5 = scmp.ge.s32.totalorder %s1373_s27, 1 }
   0xa   : > { %p1457_p4 = por %p1723_p1, %p45_p0  ;;  %p208_p7 = scmp.lt.s32.totalorder %s1373_s27, 3 }
   0xb   : > { %p1462_p6 = por %p201_p3, %p45_p0  ;;  %s1375_s10 = smov [#allocation5]  }
   0xc   : > { %s1727_s30 = scalar_select %p1457_p4, 1, 0 }
   0xd   : > { %s1728_s8 = scalar_select %p1462_p6, 1, 0 }
   0xe   : > { %p1467_p8 = pnand %p867_p5, %p208_p7  ;;  %s220_s11 = sshll.u32 %s1375_s10, 4  ;;  %s1471_s11 = int_to_ptr.vmem [resolvable:$true] %s220_s11 }
   0xf   : > { %1729 = sst [smem:[#allocation15_spill]] %s1728_s8  ;;  %s1376_s13 = smov [#allocation7]  }
  0x10   : > { %s1730_s9 = scalar_select %p1467_p8, 1, 0 }
  0x11   : > { %p1101_p9 = pneg %p1467_p8  ;;  %s236_s14 = sshll.u32 %s1376_s13, 4  ;;  %s1482_s14 = int_to_ptr.vmem [resolvable:$true] %s236_s14 }
  0x12   : > { %s1377_s15 = smov [#allocation8]   ;;  %s1185_s19 = scalar_lea.hbm %s1716_s1, 256 }
  0x13   : > { %p1478_p11 = pnand %p1101_p9, %p1723_p1  ;;  %s1484_s16 = sshll.u32 %s1377_s15, 4  ;;  %s253_s16 = int_to_ptr.vmem [resolvable:$true] %s1484_s16 }
  0x14   : > { %p1186_p12 = scmp.ne.s32.totalorder %s1716_s1, %s1185_s19  ;;  %p1192_p5 = scmp.lt.u32.totalorder %s1185_s19, %s1716_s1 }
  0x15   : > { %p1494_p13 = pneg %p1478_p11 }
  0x17   : > { %p1188_p0 = pnand %p1494_p13, %p1186_p12 }
  0x19   : > { %p1189_p3 = pneg %p1188_p0 }
  0x1b   : > { %p1194_p7 = pnand %p1192_p5, %p1189_p3 }
  0x1d   : > { %1197 = shalt.err (!%p1194_p7)
}
  0x1e   : > { %s1198_s10 = scalar_lea.vmem %s1471_s11, 256  ;;  %p1206_p2 = scmp.lt.s32.totalorder %s1471_s11, %s1471_s11 }
  0x1f   : > { %p1199_p9 = scmp.ne.s32.totalorder %s1471_s11, %s1198_s10  ;;  %p1207_p6 = scmp.lt.s32.totalorder %s1198_s10, %s1198_s10 }
  0x21   : > { %p1201_p10 = pnand %p1199_p9, %p1494_p13  ;;  %p1208_p12 = por %p1207_p6, %p1206_p2 }
  0x23   : > { %p1202_p1 = pneg %p1201_p10 }
  0x25   : > { %p1209_p0 = pnand %p1208_p12, %p1202_p1 }
  0x27   : > { %1212 = shalt.err (!%p1209_p0)
}
  0x28   : > { %s1378_s13 = smov 128   ;;  %s1379_s15 = smov 8  }
  0x29   : > { %1104 = dma.hbm_to_vmem [thread:$0]  (!%p1478_p11), %s1716_s1, 256, %s1471_s11, [#allocation6], %s1378_s13, %s1378_s13, %s1379_s15  }
  0x2a   : > { %s1213_s21 = scalar_lea.hbm %s1718_s3, 2048 }
  0x2b   : > { %p1214_p2 = scmp.ne.s32.totalorder %s1718_s3, %s1213_s21  ;;  %p1220_p10 = scmp.lt.u32.totalorder %s1213_s21, %s1718_s3 }
  0x2d   : > { %p1216_p1 = pnand %p1214_p2, %p1494_p13 }
  0x2f   : > { %p1217_p6 = pneg %p1216_p1 }
  0x31   : > { %p1222_p3 = pnand %p1220_p10, %p1217_p6 }
  0x33   : > { %1225 = shalt.err (!%p1222_p3)
}
  0x34   : > { %s1226_s11 = scalar_lea.vmem %s1482_s14, 2048  ;;  %p1234_p12 = scmp.lt.s32.totalorder %s1482_s14, %s1482_s14 }
  0x35   : > { %p1227_p5 = scmp.ne.s32.totalorder %s1482_s14, %s1226_s11  ;;  %p1235_p0 = scmp.lt.s32.totalorder %s1226_s11, %s1226_s11 }
  0x37   : > { %p1229_p7 = pnand %p1227_p5, %p1494_p13  ;;  %p1236_p2 = por %p1235_p0, %p1234_p12 }
  0x39   : > { %p1230_p9 = pneg %p1229_p7 }
  0x3b   : > { %p1237_p1 = pnand %p1236_p2, %p1230_p9 }
  0x3d   : > { %1240 = shalt.err (!%p1237_p1)
}
  0x3e   : > { %1107 = dma.hbm_to_vmem [thread:$0]  (!%p1478_p11), %s1718_s3, 2048, %s1482_s14, [#allocation6], %s1378_s13, %s1378_s13, %s1379_s15  }
  0x3f   : > { %s1241_s20 = scalar_lea.hbm %s1720_s5, 6144 }
  0x40   : > { %p1242_p6 = scmp.ne.s32.totalorder %s1720_s5, %s1241_s20  ;;  %p1248_p5 = scmp.lt.u32.totalorder %s1241_s20, %s1720_s5 }
  0x42   : > { %p1244_p10 = pnand %p1242_p6, %p1494_p13 }
  0x44   : > { %p1245_p3 = pneg %p1244_p10 }
  0x46   : > { %p1250_p7 = pnand %p1248_p5, %p1245_p3 }
  0x48   : > { %1253 = shalt.err (!%p1250_p7)
}
  0x49   : > { %s1254_s11 = scalar_lea.vmem %s253_s16, 6144  ;;  %p1262_p2 = scmp.lt.s32.totalorder %s253_s16, %s253_s16 }
  0x4a   : > { %p1255_p9 = scmp.ne.s32.totalorder %s253_s16, %s1254_s11  ;;  %p1263_p1 = scmp.lt.s32.totalorder %s1254_s11, %s1254_s11 }
  0x4c   : > { %p1257_p12 = pnand %p1255_p9, %p1494_p13  ;;  %p1264_p4 = por %p1263_p1, %p1262_p2 }
  0x4e   : > { %p1258_p0 = pneg %p1257_p12 }
  0x50   : > { %p1265_p8 = pnand %p1264_p4, %p1258_p0 }
  0x52   : > { %1268 = shalt.err (!%p1265_p8)
}
  0x53   : > { %s1380_s14 = smov 384   ;;  %s1381_s22 = smov 24  }
  0x54   : > { %1110 = dma.hbm_to_vmem [thread:$0]  (!%p1478_p11), %s1720_s5, 6144, %s253_s16, [#allocation9], %s1380_s14, %s1380_s14, %s1381_s22  }
  0x55   : > { %s1558_s8 = sadd.s32 1, %s1373_s27   ;;  %s32_s18 = sadd.s32 1, %s1369_s26 }
  0x56   : > { %s29_s17 = ssub.s32 %s1373_s27, %s1558_s8  ;;  %p39_p8 = scmp.ne.s32.totalorder %s1369_s26, %s1365_s25 }
  0x57   : > { %p30_p4 = scmp.eq.s32.totalorder %s29_s17, 0  ;;  %p40_p13 = scmp.eq.s32.totalorder %s1373_s27, 0 }
  0x58   : > { %p1122_p6 = scmp.lt.s32.totalorder %s1373_s27, 2  ;;  %p1733_p3 = scmp.eq.s32.totalorder %s1448_s28, 1 }
  0x59   : > { %s1568_s19 = scalar_select %p30_p4, %s1369_s26, %s32_s18  }
  0x5a   : > { %p41_p10 = por %p40_p13, %p39_p8  ;;  %p1572_p5 = por %p1733_p3, %p39_p8 }
  0x5b   : > { %s269_s12 = sand.u32 1, %s1369_s26   ;;  %s873_s21 = sshll.u32 %s1373_s27, 7 }
  0x5c   : > { %s872_s16 = sshll.u32 %s269_s12, 3  ;;  %s1581_s10 = scalar_lea.hbm %s1715_s0, %s873_s21 }
  0x5d   : > { %s273_s11 = scalar_lea.vmem [#allocation2], %s872_s16  ;;  %p1583_p11 = pnand %p1122_p6, %p41_p10 }
  0x5e   : > { %s280_s14 = sshll.u32 %s273_s11, 4  ;;  %s270_s13 = scalar_lea.sflag [#allocation3], %s269_s12  ;;  %s1587_s14 = int_to_ptr.vmem [resolvable:$true] %s280_s14 }
  0x5f   : > { %s1269_s15 = scalar_lea.hbm %s1581_s10, 128  ;;  %p1271_p9 = pneg %p1583_p11 }
  0x60   : > { %p1270_p7 = scmp.ne.s32.totalorder %s1581_s10, %s1269_s15  ;;  %s1274_s21 = scalar_lea.hbm %s1715_s0, 256 }
  0x61   : > { %p1275_p2 = scmp.lt.u32.totalorder %s1581_s10, %s1715_s0  ;;  %p1276_p1 = scmp.lt.u32.totalorder %s1274_s21, %s1269_s15 }
  0x62   : > { %p1272_p12 = pnand %p1271_p9, %p1270_p7  ;;  %p1278_p8 = scmp.lt.u32.totalorder %s1269_s15, %s1581_s10 }
  0x63   : > { %p1277_p4 = por %p1276_p1, %p1275_p2 }
  0x64   : > { %p1273_p0 = pneg %p1272_p12 }
  0x65   : > { %p1279_p13 = por %p1278_p8, %p1277_p4 }
  0x67   : > { %p1280_p6 = pnand %p1279_p13, %p1273_p0 }
  0x69   : > { %1283 = shalt.err (!%p1280_p6)
}
  0x6a   : > { %s1284_s12 = scalar_lea.vmem %s1587_s14, 128  ;;  %s1382_s29 = smov [#allocation2]  }
  0x6b   : > { %p1285_p10 = scmp.ne.s32.totalorder %s1587_s14, %s1284_s12  ;;  %s1289_s11 = sshll.u32 %s1382_s29, 4  ;;  %s1290_s11 = int_to_ptr.vmem [resolvable:$false] %s1289_s11 }
  0x6c   : > { %s1291_s17 = scalar_lea.vmem %s1290_s11, 256  ;;  %p1292_p12 = scmp.lt.s32.totalorder %s1587_s14, %s1290_s11 }
  0x6d   : > { %p1287_p3 = pnand %p1285_p10, %p1271_p9  ;;  %p1293_p2 = scmp.lt.s32.totalorder %s1291_s17, %s1284_s12 }
  0x6f   : > { %p1288_p7 = pneg %p1287_p3  ;;  %p1294_p1 = por %p1293_p2, %p1292_p12 }
  0x71   : > { %p1295_p4 = pnand %p1294_p1, %p1288_p7 }
  0x73   : > { %1298 = shalt.err (!%p1295_p4)
}
  0x74   : > { %1114 = dma.hbm_to_vmem [thread:$0]  (!%p1583_p11), %s1581_s10, 128, %s1587_s14, %s270_s13  }
  0x75   : > { %p1736_p0 = scmp.ne.s32.totalorder %s1730_s9, 0 }
  0x76   : > { %s1617_s15 = sand.u32 (!%p1736_p0), 1, %s1365_s25   ;;  %p1737_p9 = scmp.ne.s32.totalorder (!%p1736_p0), %s1727_s30, 0 }
  0x77   : > { %289 = sbr.rel (%p1736_p0) target bundleno = 858 (0x35a), region = 48  ;;  %s875_s18 = sshll.u32 (!%p1736_p0), %s1617_s15, 3 }
  0x78   : > { %s292_s21 = scalar_lea.sflag (!%p1736_p0), [#allocation3], %s1617_s15  ;;  %s295_s16 = scalar_lea.vmem (!%p1736_p0), [#allocation2], %s875_s18 }
  0x7e   : > { %1344 = dma.done.wait (%p1737_p9), %s292_s21, 128  }
  0x7f   : > { %1346 = vsyncadd (%p1737_p9), %s292_s21, 4294967168  ;;  %p1738_p8 = scmp.eq.s32.totalorder %s1448_s28, 0 }
  0x81   : > { %1348 = dma.done.wait (%p1738_p8), [#allocation6], 2304   ;;  %p1739_p11 = pmov %p1738_p8 }
  0x82   : > { %p1740_p13 = pmov %p1738_p8 }
  0x83   : > { %1350 = vsyncadd (%p1739_p11), [#allocation6], 4294964992 }
  0x84   : > { %1352 = dma.done.wait (%p1740_p13), [#allocation9], 6144   ;;  %p1741_p6 = pmov %p1738_p8 }
  0x85   : > { %v1383_v0 = vmov 0.0|0.0   ;;  %vm1384_vm0 = vmmov 0   ;;  %v1385_v1 = vmov 0.0   ;;  %v339_v2 = vld [vmem:[#allocation5] sm:$0xff]  ;;  %v340_v3 = vld [vmem:[#allocation5 + $0x8] sm:$0xff]  ;;  %v423_v5 = vld [vmem:[#allocation7] sm:$0xff] }
  0x86   : > { %1354 = vsyncadd (%p1741_p6), [#allocation9], 4294961152  ;;  %1000 = vmatprep.subr.bf16.mxu0 %v1383_v0  ;;  %927 = vmatprep.mubr.msk.f32.mxu0 %vm1384_vm0, %v1385_v1  ;;  %v1001_v4 = vpack.c.bf16 %v340_v3, %v339_v2  ;;  %v424_v6 = vld [vmem:[#allocation7 + $0x8] sm:$0xff]  ;;  %v425_v7 = vld [vmem:[#allocation7 + $0x10] sm:$0xff]  ;;  %vm348_vm1 = vcmask 130048   ;;  %s1083_s23 = smul.u32 24, %s1617_s15 }
  0x87   : > { %1003 = vmatprep.subr.bf16.mxu1 %v1383_v0  ;;  %962 = vmatprep.mubr.msk.f32.mxu1 %vm1384_vm0, %v1385_v1  ;;  %v1004_v8 = vpack.c.bf16 %v424_v6, %v423_v5  ;;  %v426_v9 = vld [vmem:[#allocation7 + $0x18] sm:$0xff]  ;;  %v338_v10 = vld [vmem:[%s295_s16] sm:$0xff]  ;;  %v429_v15 = vld [vmem:[#allocation7 + $0x30] sm:$0xff]  ;;  %s1084_s12 = smul.u32 384, %s1448_s28  ;;  %s753_s28 = scalar_lea.sflag [#allocation4], %s1617_s15 }
  0x88   : > { %1002 = vmatpush3.bf16.msra.mxu0 %v1001_v4  ;;  %v1007_v11 = vpack.c.bf16 %v426_v9, %v425_v7  ;;  %v427_v12 = vld [vmem:[#allocation7 + $0x20] sm:$0xff]  ;;  %v428_v13 = vld [vmem:[#allocation7 + $0x28] sm:$0xff]  ;;  %v430_v16 = vld [vmem:[#allocation7 + $0x38] sm:$0xff]  ;;  %s337_s29 = scalar_lea.vmem [#allocation10], %s1083_s23  ;;  %s1386_s30 = smov [#allocation10]  }
  0x89   : > { %1005 = vmatpush3.bf16.msra.mxu1 %v1004_v8  ;;  %v1010_v14 = vpack.c.bf16 %v428_v13, %v427_v12  ;;  %v1013_v17 = vpack.c.bf16 %v430_v16, %v429_v15  ;;  %v431_v18 = vld [vmem:[#allocation7 + $0x40] sm:$0xff]  ;;  %v432_v19 = vld [vmem:[#allocation7 + $0x48] sm:$0xff]  ;;  %v433_v21 = vld [vmem:[#allocation7 + $0x50] sm:$0xff]  ;;  %s767_s11 = sshll.u32 %s337_s29, 4  ;;  %s1671_s21 = scalar_lea.hbm %s1722_s7, %s1084_s12  ;;  %s1673_s11 = int_to_ptr.vmem [resolvable:$true] %s767_s11 }
  0x8a   : > { %1006 = vmatprep.subr.bf16.mxu1 %v1383_v0  ;;  %v1016_v20 = vpack.c.bf16 %v432_v19, %v431_v18  ;;  %v434_v22 = vld [vmem:[#allocation7 + $0x58] sm:$0xff]  ;;  %v435_v24 = vld [vmem:[#allocation7 + $0x60] sm:$0xff]  ;;  %v436_v25 = vld [vmem:[#allocation7 + $0x68] sm:$0xff]  ;;  %s1299_s16 = scalar_lea.vmem %s1673_s11, 384  ;;  %s1303_s9 = sshll.u32 %s1386_s30, 4  ;;  %s1304_s9 = int_to_ptr.vmem [resolvable:$false] %s1303_s9 }
  0x8b   : > { %928 = vmatmul.mubr.msk.f32.vlgmr.msra.gmra.mrb[0].mxu0 %vm348_vm1, %v338_v10  ;;  %v1019_v23 = vpack.c.bf16 %v434_v22, %v433_v21  ;;  %v1022_v26 = vpack.c.bf16 %v436_v25, %v435_v24  ;;  %v437_v27 = vld [vmem:[#allocation7 + $0x70] sm:$0xff]  ;;  %v438_v28 = vld [vmem:[#allocation7 + $0x78] sm:$0xff]  ;;  %v523_v30 = vld [vmem:[#allocation8 + $0x8] sm:$0xff]  ;;  %p1300_p10 = scmp.ne.s32.totalorder %s1673_s11, %s1299_s16  ;;  %s1305_s10 = scalar_lea.vmem %s1304_s9, 768 }
  0x8c   : > { %651 = vmatprep.mubr.f32.mxu0 %v1385_v1  ;;  %v1025_v29 = vpack.c.bf16 %v438_v28, %v437_v27  ;;  %v526_v31 = vld [vmem:[#allocation8 + $0x20] sm:$0xff]  ;;  %v525_v34 = vld [vmem:[#allocation8 + $0x18] sm:$0xff]  ;;  %v532_v37 = vld [vmem:[#allocation8 + $0x50] sm:$0xff]  ;;  %p1306_p12 = scmp.lt.s32.totalorder %s1673_s11, %s1304_s9  ;;  %p1307_p2 = scmp.lt.s32.totalorder %s1305_s10, %s1299_s16 }
  0x8d   : > { %1008 = vmatpush3.bf16.msra.mxu1 %v1007_v11  ;;  %v522_v32 = vld [vmem:[#allocation8] sm:$0xff]  ;;  %v1027_v33 = vpack.c.bf16 %v526_v31, %v523_v30  ;;  %v529_v36 = vld [vmem:[#allocation8 + $0x38] sm:$0xff]  ;;  %v528_v38 = vld [vmem:[#allocation8 + $0x30] sm:$0xff]  ;;  %p1301_p3 = pnand %p1300_p10, %p1572_p5 }
  0x8e   : > { %1009 = vmatprep.subr.bf16.mxu1 %v1383_v0  ;;  %v1029_v35 = vpack.c.bf16 %v525_v34, %v522_v32  ;;  %v1031_v39 = vpack.c.bf16 %v532_v37, %v529_v36  ;;  %v531_v40 = vld [vmem:[#allocation8 + $0x48] sm:$0xff]  ;;  %v538_v43 = vld [vmem:[#allocation8 + $0x80] sm:$0xff]  ;;  %v537_v46 = vld [vmem:[#allocation8 + $0x78] sm:$0xff]  ;;  %p1308_p1 = por %p1307_p2, %p1306_p12 }
  0x8f   : > { %1028 = vmatprep.subr.bf16.mxu0 %v1027_v33  ;;  %v1033_v41 = vpack.c.bf16 %v531_v40, %v528_v38  ;;  %v535_v42 = vld [vmem:[#allocation8 + $0x68] sm:$0xff]  ;;  %v534_v45 = vld [vmem:[#allocation8 + $0x60] sm:$0xff]  ;;  %v524_v52 = vld [vmem:[#allocation8 + $0x10] sm:$0xff]  ;;  %p1302_p7 = pneg %p1301_p3 }
  0x90   : > { %1030 = vmatpush1.bf16.msra.mxu0 %v1029_v35  ;;  %v1035_v44 = vpack.c.bf16 %v538_v43, %v535_v42  ;;  %v1037_v47 = vpack.c.bf16 %v537_v46, %v534_v45  ;;  %v879_v48 = vld [vmem:[%s1717_s2] ss:$0 sm:$0xff]  ;;  %v527_v53 = vld [vmem:[#allocation8 + $0x28] sm:$0xff]  ;;  %v533_v56 = vld [vmem:[#allocation8 + $0x58] sm:$0xff] }
  0x91   : > { %1011 = vmatpush3.bf16.msra.mxu1 %v1010_v14  ;;  %1032 = vmatprep.subr.bf16.mxu0 %v1031_v39  ;;  %v1060_v54 = vpack.c.bf16 %v527_v53, %v524_v52  ;;  %v530_v55 = vld [vmem:[#allocation8 + $0x40] sm:$0xff]  ;;  %v536_v59 = vld [vmem:[#allocation8 + $0x70] sm:$0xff]  ;;  %v539_v60 = vld [vmem:[#allocation8 + $0x88] sm:$0xff]  ;;  %v572_v53 = vlaneseq  ;;  %p1309_p4 = pnand %p1308_p1, %p1302_p7 }
  0x92   : > { %1012 = vmatprep.subr.bf16.mxu1 %v1383_v0  ;;  %v1063_v58 = vpack.c.bf16 %v533_v56, %v530_v55  ;;  %v1066_v61 = vpack.c.bf16 %v539_v60, %v536_v59  ;;  %v541_v62 = vld [vmem:[#allocation8 + $0x98] sm:$0xff]  ;;  %v544_v63 = vld [vmem:[#allocation8 + $0xb0] sm:$0xff]  ;;  %v543_v4 = vld [vmem:[#allocation8 + $0xa8] sm:$0xff] }
  0x93   : > { %v1039_v2 = vpack.c.bf16 %v544_v63, %v541_v62  ;;  %v540_v3 = vld [vmem:[#allocation8 + $0x90] sm:$0xff]  ;;  %v542_v5 = vld [vmem:[#allocation8 + $0xa0] sm:$0xff]  ;;  %v545_v7 = vld [vmem:[#allocation8 + $0xb8] sm:$0xff] }
  0x94   : > { %1034 = vmatpush1.bf16.msra.mxu0 %v1033_v41  ;;  %v1041_v6 = vpack.c.bf16 %v543_v4, %v540_v3  ;;  %v547_v8 = vld [vmem:[#allocation8 + $0xc8] sm:$0xff]  ;;  %v550_v9 = vld [vmem:[#allocation8 + $0xe0] sm:$0xff]  ;;  %v549_v12 = vld [vmem:[#allocation8 + $0xd8] sm:$0xff] }
  0x95   : > { %1014 = vmatpush3.bf16.msra.mxu1 %v1013_v17  ;;  %1036 = vmatprep.subr.bf16.mxu0 %v1035_v44  ;;  %v1043_v10 = vpack.c.bf16 %v550_v9, %v547_v8  ;;  %v546_v11 = vld [vmem:[#allocation8 + $0xc0] sm:$0xff]  ;;  %v548_v13 = vld [vmem:[#allocation8 + $0xd0] sm:$0xff]  ;;  %v551_v15 = vld [vmem:[#allocation8 + $0xe8] sm:$0xff] }
  0x96   : > { %1015 = vmatprep.subr.bf16.mxu1 %v1383_v0  ;;  %v1045_v14 = vpack.c.bf16 %v549_v12, %v546_v11  ;;  %v1072_v16 = vpack.c.bf16 %v551_v15, %v548_v13  ;;  %v553_v17 = vld [vmem:[#allocation8 + $0xf8] sm:$0xff]  ;;  %v556_v18 = vld [vmem:[#allocation8 + $0x110] sm:$0xff]  ;;  %v555_v21 = vld [vmem:[#allocation8 + $0x108] sm:$0xff] }
  0x97   : > { %v1047_v19 = vpack.c.bf16 %v556_v18, %v553_v17  ;;  %v554_v22 = vld [vmem:[#allocation8 + $0x100] sm:$0xff]  ;;  %v557_v24 = vld [vmem:[#allocation8 + $0x118] sm:$0xff]  ;;  %v559_v25 = vld [vmem:[#allocation8 + $0x128] sm:$0xff] }
  0x98   : > { %1038 = vmatpush1.bf16.msra.mxu0 %v1037_v47  ;;  %v1075_v27 = vpack.c.bf16 %v557_v24, %v554_v22  ;;  %v561_v30 = vld [vmem:[#allocation8 + $0x138] sm:$0xff]  ;;  %v560_v31 = vld [vmem:[#allocation8 + $0x130] sm:$0xff]  ;;  %v563_v33 = vld [vmem:[#allocation8 + $0x148] sm:$0xff] }
  0x99   : > { %1017 = vmatpush3.bf16.msra.mxu1 %v1016_v20  ;;  %1040 = vmatprep.subr.bf16.mxu0 %v1039_v2  ;;  %v552_v20 = vld [vmem:[#allocation8 + $0xf0] sm:$0xff]  ;;  %v565_v34 = vld [vmem:[#allocation8 + $0x158] sm:$0xff]  ;;  %v1078_v36 = vpack.c.bf16 %v563_v33, %v560_v31  ;;  %v567_v39 = vld [vmem:[#allocation8 + $0x168] sm:$0xff] }
  0x9a   : > { %1018 = vmatprep.subr.bf16.mxu1 %v1383_v0  ;;  %v568_v35 = vld [vmem:[#allocation8 + $0x170] sm:$0xff]  ;;  %v566_v40 = vld [vmem:[#allocation8 + $0x160] sm:$0xff]  ;;  %v569_v41 = vld [vmem:[#allocation8 + $0x178] sm:$0xff] }
  0x9b   : > { %v1055_v37 = vpack.c.bf16 %v568_v35, %v565_v34  ;;  %v564_v38 = vld [vmem:[#allocation8 + $0x150] sm:$0xff]  ;;  %v1081_v43 = vpack.c.bf16 %v569_v41, %v566_v40  ;;  %v881_v44 = vld [vmem:[%s1719_s4] ss:$0 sm:$0xff] }
  0x9c   : > { %1042 = vmatpush1.bf16.msra.mxu0 %v1041_v6  ;;  %v1057_v42 = vpack.c.bf16 %v567_v39, %v564_v38  ;;  %v570_v56 = vld [vmem:[%s1721_s6] sm:$0x7] }
  0x9d   : > { %1020 = vmatpush3.bf16.msra.mxu1 %v1019_v23  ;;  %1044 = vmatprep.subr.bf16.mxu0 %v1043_v10  ;;  %v1049_v23 = vpack.c.bf16 %v555_v21, %v552_v20 }
  0x9e   : > { %1021 = vmatprep.subr.bf16.mxu1 %v1383_v0 }
  0xa0   : > { %1046 = vmatpush1.bf16.msra.mxu0 %v1045_v14 }
  0xa1   : > { %1023 = vmatpush3.bf16.msra.mxu1 %v1022_v26  ;;  %v562_v26 = vld [vmem:[#allocation8 + $0x140] sm:$0xff]  ;;  %1048 = vmatprep.subr.bf16.mxu0 %v1047_v19 }
  0xa2   : > { %1024 = vmatprep.subr.bf16.mxu1 %v1383_v0  ;;  %v1051_v28 = vpack.c.bf16 %v562_v26, %v559_v25 }
  0xa4   : > { %1050 = vmatpush1.bf16.msra.mxu0 %v1049_v23 }
  0xa5   : > { %1026 = vmatpush3.bf16.msra.mxu1 %v1025_v29  ;;  %v558_v29 = vld [vmem:[#allocation8 + $0x120] sm:$0xff]  ;;  %1052 = vmatprep.subr.bf16.mxu0 %v1051_v28 }
  0xa6   : > { %1059 = vmatprep.subr.bf16.mxu1 %v1383_v0  ;;  %v1053_v32 = vpack.c.bf16 %v561_v30, %v558_v29 }
  0xa8   : > { %1054 = vmatpush1.bf16.msra.mxu0 %v1053_v32 }
  0xa9   : > { %1056 = vmatprep.subr.bf16.mxu0 %v1055_v37 }
  0xac   : > { %1058 = vmatpush1.bf16.msra.mxu0 %v1057_v42 }
 0x15e   : > { %v418_v49 = vpop.f32.mrb[0].mxu0 }
 0x15f   : > { %v419_v50 = vadd.f32 %v879_v48, %v418_v49  ;;  %v929_v51 = vpop.f32.mrb[1].mxu0 }
 0x161   : > { %1169 = vtanh.f32 %v419_v50 }
 0x16b   : > { %v1170_v57 = vpop.eup %1169 }
 0x16c   : > { %963 = vmatmul.mubr.f32.vlgmr.msra.gmra.mrb[0].mxu1 %v1170_v57 }
 0x16d   : > { %1061 = vmatpush3.bf16.msra.mxu1 %v1060_v54  ;;  %997 = vmatprep.mubr.msk.f32.mxu1 %vm1384_vm0, %v1385_v1  ;;  %v1069_v1 = vpack.c.bf16 %v545_v7, %v542_v5 }
 0x16e   : > { %1062 = vmatprep.subr.bf16.mxu1 %v1383_v0 }
 0x171   : > { %1064 = vmatpush3.bf16.msra.mxu1 %v1063_v58 }
 0x172   : > { %1065 = vmatprep.subr.bf16.mxu1 %v1383_v0 }
 0x175   : > { %1067 = vmatpush3.bf16.msra.mxu1 %v1066_v61 }
 0x176   : > { %1068 = vmatprep.subr.bf16.mxu1 %v1383_v0 }
 0x179   : > { %1070 = vmatpush3.bf16.msra.mxu1 %v1069_v1 }
 0x17a   : > { %1071 = vmatprep.subr.bf16.mxu1 %v1383_v0 }
 0x17d   : > { %1073 = vmatpush3.bf16.msra.mxu1 %v1072_v16 }
 0x17e   : > { %1074 = vmatprep.subr.bf16.mxu1 %v1383_v0 }
 0x181   : > { %1076 = vmatpush3.bf16.msra.mxu1 %v1075_v27 }
 0x182   : > { %1077 = vmatprep.subr.bf16.mxu1 %v1383_v0 }
 0x185   : > { %1079 = vmatpush3.bf16.msra.mxu1 %v1078_v36 }
 0x186   : > { %1080 = vmatprep.subr.bf16.mxu1 %v1383_v0  ;;  %v573_v0 = vshrl.u32 %v572_v53, 7 }
 0x188   : > { %v574_v54 = vsub.s32 0, %v573_v0  ;;  %v582_v55 = vsub.s32 2, %v573_v0  ;;  %v578_v57 = vsub.s32 1, %v573_v0 }
 0x189   : > { %1082 = vmatpush3.bf16.msra.mxu1 %v1081_v43 }
 0x18a   : > { %v575_v58 = vrot.slane %v570_v56, %v574_v54  ;;  %v583_v59 = vrot.slane %v570_v56, %v582_v55  ;;  %v579_v60 = vrot.slane %v570_v56, %v578_v57 }
 0x23f   : > { %v512_v45 = vpop.f32.mrb[0].mxu1 }
 0x240   : > { %v513_v46 = vadd.f32 %v881_v44, %v512_v45  ;;  %v964_v47 = vpop.f32.mrb[1].mxu1 }
 0x242   : > { %v517_v48 = vmin.f32 %v513_v46, 0.0  ;;  %vm516_vm2 = vcmp.gt.f32.partialorder %v513_v46, 0.0 }
 0x244   : > { %v518_v49 = vmul.f32 1.442695, %v517_v48 }
 0x246   : > { %1171 = vpow2.f32 %v518_v49 }
 0x250   : > { %v1172_v50 = vpop.eup %1171 }
 0x251   : > { %v882_v51 = vadd.f32 -1.0, %v1172_v50 }
 0x253   : > { %v521_v52 = vsel %vm516_vm2, %v513_v46, %v882_v51 }
 0x254   : > { %652 = vmatmul.mubr.f32.vlgmr.msra.gmra.mrb[2].mxu0 %v521_v52  ;;  %998 = vmatmul.mubr.f32.vlgmr.msra.gmra.mrb[2].mxu1 %v521_v52 }
 0x327   : > { %v653_v61 = vpop.f32.mrb[2].mxu0  ;;  %v724_v62 = vpop.f32.mrb[2].mxu1 }
 0x328   : > { %v654_v63 = vadd.f32 %v653_v61, %v575_v58  ;;  %v725_v2 = vadd.f32 %v724_v62, %v583_v59  ;;  %v655_v3 = vpop.f32.mrb[3].mxu0  ;;  %v999_v4 = vpop.f32.mrb[3].mxu1 }
 0x329   : > { %v656_v5 = vadd.f32 %v655_v3, %v579_v60 }
 0x32a   : > { %v728_v6 = vsub.f32 0.0, %v654_v63  ;;  %v730_v7 = vsub.f32 0.0, %v725_v2 }
 0x32b   : > { %v729_v1 = vsub.f32 0.0, %v656_v5 }
 0x32c   : > { %v731_v8 = vmul.f32 1.442695, %v728_v6  ;;  %v735_v9 = vmul.f32 1.442695, %v730_v7 }
 0x32d   : > { %v733_v10 = vmul.f32 1.442695, %v729_v1 }
 0x32e   : > { %1173 = vpow2.f32 %v731_v8 }
 0x32f   : > { %1175 = vpow2.f32 %v735_v9 }
 0x330   : > { %1177 = vpow2.f32 %v733_v10 }
 0x338   : > { %v1174_v11 = vpop.eup %1173 }
 0x339   : > { %v1176_v12 = vpop.eup %1175  ;;  %v737_v13 = vadd.f32 1.0, %v1174_v11 }
 0x33a   : > { %v1178_v14 = vpop.eup %1177  ;;  %v739_v15 = vadd.f32 1.0, %v1176_v12 }
 0x33b   : > { %1179 = vrcp.f32 %v737_v13  ;;  %v738_v16 = vadd.f32 1.0, %v1178_v14 }
 0x33c   : > { %1181 = vrcp.f32 %v739_v15 }
 0x33d   : > { %1183 = vrcp.f32 %v738_v16 }
 0x345   : > { %v1180_v17 = vpop.eup %1179 }
 0x346   : > { %v1182_v18 = vpop.eup %1181  ;;  %v743_v19 = vmax.f32 %v1180_v17, 1e-08 }
 0x347   : > { %v1184_v20 = vpop.eup %1183  ;;  %v745_v21 = vmax.f32 %v1182_v18, 1e-08 }
 0x348   : > { %v746_v22 = vmin.f32 %v743_v19, 1.0  ;;  %v744_v23 = vmax.f32 %v1184_v20, 1e-08 }
 0x349   : > { %v748_v24 = vmin.f32 %v745_v21, 1.0 }
 0x34a   : > { %v747_v25 = vmin.f32 %v744_v23, 1.0  ;;  %749 = vst [vmem:[%s337_s29] sm:$0xff] %v746_v22 }
 0x34b   : > { %751 = vst [vmem:[%s337_s29 + $0x10] sm:$0xff] %v748_v24 }
 0x34c   : > { %750 = vst [vmem:[%s337_s29 + $0x8] sm:$0xff] %v747_v25 }
 0x34d   : > { %1312 = shalt.err (!%p1309_p4)
}
 0x34e   : > { %s1313_s15 = scalar_lea.hbm %s1671_s21, 384  ;;  %s1317_s13 = scalar_lea.hbm %s1722_s7, 768 }
 0x34f   : > { %p1314_p0 = scmp.ne.s32.totalorder %s1671_s21, %s1313_s15  ;;  %p1318_p11 = scmp.lt.u32.totalorder %s1671_s21, %s1722_s7 }
 0x350   : > { %p1319_p13 = scmp.lt.u32.totalorder %s1317_s13, %s1313_s15  ;;  %p1321_p10 = scmp.lt.u32.totalorder %s1313_s15, %s1671_s21 }
 0x351   : > { %p1315_p9 = pnand %p1314_p0, %p1572_p5 }
 0x352   : > { %p1320_p6 = por %p1319_p13, %p1318_p11 }
 0x353   : > { %p1316_p8 = pneg %p1315_p9 }
 0x354   : > { %p1322_p3 = por %p1321_p10, %p1320_p6 }
 0x356   : > { %p1323_p7 = pnand %p1322_p3, %p1316_p8 }
 0x358   : > { %1326 = shalt.err (!%p1323_p7)
}
 0x359   : > { %1099 = dma.vmem_to_hbm [thread:$0]  (%p1572_p5), %s1673_s11, 384, %s1671_s21, %s753_s28  }
 0x35a PF: > { %s1742_s29 = sld [smem:[#allocation15_spill]]  ;;  %s779_s17 = sand.u32 1, %s1361_s24  }
 0x35b   : > { %p1744_p2 = scmp.ge.s32.totalorder %s1373_s27, 2  ;;  %s780_s18 = scalar_lea.sflag [#allocation4], %s779_s17 }
 0x360   : > { %p1743_p12 = scmp.ne.s32.totalorder %s1742_s29, 0 }
 0x362   : > { %p1116_p1 = pnand %p1744_p2, %p1743_p12 }
 0x364   : > { %1356 = dma.done.wait (!%p1116_p1), %s780_s18, 384  }
 0x365   : > { %1358 = vsyncadd (!%p1116_p1), %s780_s18, 4294966912  ;;  %p22_p4 = scmp.ge.s32.totalorder %s1558_s8, 4   ;;  %s1745_s24 = smov %s1365_s25 }
 0x366   : > { %s1746_s25 = smov %s1369_s26  ;;  %s1747_s26 = smov %s1568_s19 }
 0x367   : > { %s1748_s27 = smov %s1558_s8  ;;  %24 = sbr.rel (!%p22_p4) target bundleno = 7 (0x7), region = 105 }
 0x36e   :  { %785 = vsyncpa [#allocation3], 1 }
 0x36f   :  { %787 = vsyncpa [#allocation3 + $0x1], 1 }
 0x370   :  { %788 = vsyncpa [#allocation6], 1 }
 0x371   :  { %789 = vsyncpa [#allocation9], 1 }
 0x372   :  { %790 = vsyncpa [#allocation4], 1 }
 0x373   :  { %792 = vsyncpa [#allocation4 + $0x1], 1 }

</bundles_post_ra>
